<compile_context>
chip_gen: v7x
topology: tpu7x:2x2x1
jax: 0.10.0
libtpu: 0.0.40
codegen_flags: <defaults>
</compile_context>

<pallas_src>
import functools

import jax
import jax.numpy as jnp
from jax.experimental import pallas as pl
from jax.experimental.pallas import tpu as pltpu


LANE = 128  # lane width / output padding granule


def _round_up(x, m):
    return ((x + m - 1) // m) * m


def _num_tensorcores_per_chip():
    """v7x has 2 TensorCores per chip; v5e/v6e have 1."""
    try:
        kind = jax.devices()[0].device_kind.lower()
    except Exception:
        return 1
    return 2 if "v7" in kind else 1


# ----------------------------------------------------------------------------
# Fused kernel: whole MLP in one body.
#   refs = (x_ref, w0, b0, w1, b1, ..., w_last, b_last, o_ref)
# Hidden layers: h = relu(h @ W + b)   (BN already folded into W/b)
# Final layer  : o = h @ W + b
# Matmul operands in bf16 (MXU-native), accumulation / bias / ReLU in f32.
# ----------------------------------------------------------------------------
def make_mlp_kernel(num_hidden):
    def kernel(*refs):
        x_ref = refs[0]
        o_ref = refs[-1]
        params = refs[1:-1]  # alternating (w, b) refs, num_hidden + 1 pairs

        h = x_ref[...].astype(jnp.float32)
        for i in range(num_hidden + 1):
            w = params[2 * i][...]          # bf16, resident in VMEM
            b = params[2 * i + 1][...]      # f32
            h = jnp.dot(h.astype(w.dtype), w,
                        preferred_element_type=jnp.float32) + b
            if i < num_hidden:
                h = jnp.maximum(h, 0.0)     # relu_(); dropout: identity (eval)
        o_ref[...] = h.astype(o_ref.dtype)

    return kernel


# ----------------------------------------------------------------------------
# Wrapper: batch-tiled grid, weights resident via constant index_maps.
# ----------------------------------------------------------------------------
def mlp_forward(x, ws, bs, *, out_channels, tile_n=None):
    n, c = x.shape
    out_p = ws[-1].shape[1]
    num_hidden = len(ws) - 1

    if tile_n is None:
        ntc = _num_tensorcores_per_chip()
        if ntc > 1 and n % ntc == 0 and (n // ntc) % 8 == 0:
            tile_n = n // ntc      # one tile per TensorCore (v7x)
        else:
            tile_n = n             # single grid step (v5e / v6e)

    n_pad = _round_up(n, tile_n)
    x_in = x
    if n_pad != n:                 # only pad batch rows, never the feature dim
        x_in = jnp.zeros((n_pad, c), x.dtype).at[:n].set(x)

    in_specs = [pl.BlockSpec((tile_n, c), lambda i: (i, 0))]
    operands = [x_in]
    for w, b in zip(ws, bs):
        in_specs.append(pl.BlockSpec(w.shape, lambda i: (0, 0)))  # resident
        in_specs.append(pl.BlockSpec(b.shape, lambda i: (0, 0)))  # resident
        operands += [w, b]

    out_full = pl.pallas_call(
        make_mlp_kernel(num_hidden),
        out_shape=jax.ShapeDtypeStruct((n_pad, out_p), x.dtype),
        grid=(n_pad // tile_n,),
        in_specs=in_specs,
        out_specs=pl.BlockSpec((tile_n, out_p), lambda i: (i, 0)),
        compiler_params=pltpu.CompilerParams(
            dimension_semantics=("parallel",),
        ),
    )(*operands)

    return out_full[:n, :out_channels]


# ----------------------------------------------------------------------------
# Parameter construction (raw PyTorch-like params) + BN-fold + final-dim pad.
# ----------------------------------------------------------------------------
def init_mlp_params(key, in_channels, out_channels, hidden_channels, num_layers):
    """Raw params: lins = [{w:[in,out], b:[1,out]}...], bns = [{scale, shift}...]."""
    eps = 1e-5
    lins, bns = [], []
    dims = [in_channels] + [hidden_channels] * num_layers
    for li in range(num_layers):
        fan_in, fan_out = dims[li], dims[li + 1]
        key, kw, kb, kg, kbeta, km, kv = jax.random.split(key, 7)
        bound = 1.0 / jnp.sqrt(jnp.float32(fan_in))
        w = jax.random.uniform(kw, (fan_in, fan_out), jnp.float32, -bound, bound)
        b = jax.random.uniform(kb, (1, fan_out), jnp.float32, -bound, bound)
        gamma = 1.0 + 0.1 * jax.random.normal(kg, (1, fan_out), jnp.float32)
        beta = 0.1 * jax.random.normal(kbeta, (1, fan_out), jnp.float32)
        running_mean = 0.1 * jax.random.normal(km, (1, fan_out), jnp.float32)
        running_var = 1.0 + 0.1 * jax.random.uniform(kv, (1, fan_out), jnp.float32)
        scale = gamma / jnp.sqrt(running_var + eps)
        shift = beta - running_mean * scale
        lins.append(dict(w=w, b=b))
        bns.append(dict(scale=scale, shift=shift))

    fan_in, fan_out = hidden_channels, out_channels
    key, kw, kb = jax.random.split(key, 3)
    bound = 1.0 / jnp.sqrt(jnp.float32(fan_in))
    lins.append(dict(
        w=jax.random.uniform(kw, (fan_in, fan_out), jnp.float32, -bound, bound),
        b=jax.random.uniform(kb, (1, fan_out), jnp.float32, -bound, bound),
    ))
    return dict(lins=lins, bns=bns)


def fold_and_pad_params(raw, lane=LANE, weight_dtype=jnp.bfloat16):
    """Fold BN_i (eval affine) into layer i+1; bf16 weights; pad only the final
    layer's output dim to `lane` so the output store is lane-dense."""
    lins, bns = raw["lins"], raw["bns"]
    num_hidden = len(bns)
    ws, bs = [], []
    for i in range(num_hidden + 1):
        w = lins[i]["w"]
        b = lins[i]["b"]
        if i > 0:
            scale = bns[i - 1]["scale"]  # (1, H)
            shift = bns[i - 1]["shift"]  # (1, H)
            b = b + shift @ w                  # uses UNscaled w
            w = scale.reshape(-1, 1) * w       # row-scale: diag(scale) @ W
        if i == num_hidden:                    # pad final output dim only
            in_dim, out_dim = w.shape
            out_p = _round_up(out_dim, lane)
            w = jnp.zeros((in_dim, out_p), w.dtype).at[:, :out_dim].set(w)
            b = jnp.zeros((1, out_p), b.dtype).at[:, :out_dim].set(b)
        ws.append(w.astype(weight_dtype))      # bf16 into the MXU
        bs.append(b.astype(jnp.float32))       # bias-add stays f32
    return ws, bs


def mlp_reference(x, raw):
    """Pure-JAX eval-mode reference with the ORIGINAL (unfolded, f32) params."""
    h = x
    for lin, bn in zip(raw["lins"][:-1], raw["bns"]):
        h = jnp.maximum(h @ lin["w"] + lin["b"], 0.0)
        h = h * bn["scale"] + bn["shift"]
    last = raw["lins"][-1]
    return h @ last["w"] + last["b"]


# ----------------------------------------------------------------------------
if __name__ == "__main__":
    in_channels, out_channels, hidden_channels = 16, 8, 32
    num_layers = 3          # 3 hidden (lin+relu+BN) layers + final linear
    batch = 256             # 1 grid step on v5e/v6e, 2 parallel tiles on v7x

    key = jax.random.PRNGKey(0)
    key, kx = jax.random.split(key)
    x = jax.random.normal(kx, (batch, in_channels), jnp.float32)

    raw = init_mlp_params(key, in_channels, out_channels, hidden_channels, num_layers)
    ws, bs = fold_and_pad_params(raw)

    fwd = jax.jit(functools.partial(mlp_forward, out_channels=out_channels))
    out = fwd(x, ws, bs)
    out = jax.block_until_ready(out)

    ref = mlp_reference(x, raw)
    assert out.shape == (batch, out_channels)
    # bf16 matmul operands (f32 accumulation) -> slightly looser tolerance.
    assert jnp.allclose(out, ref, atol=2e-2, rtol=2e-2), "mismatch vs reference"

    print("KERNEL_OK")
</pallas_src>

<mosaic_0001>
module attributes {stable_mosaic.version = 11 : i64} {
  func.func @kernel(%arg0: i32, %arg1: memref<256x16xf32, #tpu.memory_space<vmem>>, %arg2: memref<16x32xbf16, #tpu.memory_space<vmem>>, %arg3: memref<1x32xf32, #tpu.memory_space<vmem>>, %arg4: memref<32x32xbf16, #tpu.memory_space<vmem>>, %arg5: memref<1x32xf32, #tpu.memory_space<vmem>>, %arg6: memref<32x32xbf16, #tpu.memory_space<vmem>>, %arg7: memref<1x32xf32, #tpu.memory_space<vmem>>, %arg8: memref<32x128xbf16, #tpu.memory_space<vmem>>, %arg9: memref<1x128xf32, #tpu.memory_space<vmem>>, %arg10: memref<256x128xf32, #tpu.memory_space<vmem>>) attributes {dimension_semantics = [#tpu.dimension_semantics<parallel>], iteration_bounds = array<i64: 1>, scalar_prefetch = 0 : i64, scratch_operands = 0 : i64, tpu.core_type = #tpu.core_type<tc>, window_params = [{transform_indices = @transform_0, window_bounds = array<i64: 256, 16>}, {pipeline_mode = #tpu.pipeline_mode<synchronous>, transform_indices = @transform_1, window_bounds = array<i64: 16, 32>}, {pipeline_mode = #tpu.pipeline_mode<synchronous>, transform_indices = @transform_2, window_bounds = array<i64: 1, 32>}, {pipeline_mode = #tpu.pipeline_mode<synchronous>, transform_indices = @transform_3, window_bounds = array<i64: 32, 32>}, {pipeline_mode = #tpu.pipeline_mode<synchronous>, transform_indices = @transform_4, window_bounds = array<i64: 1, 32>}, {pipeline_mode = #tpu.pipeline_mode<synchronous>, transform_indices = @transform_5, window_bounds = array<i64: 32, 32>}, {pipeline_mode = #tpu.pipeline_mode<synchronous>, transform_indices = @transform_6, window_bounds = array<i64: 1, 32>}, {pipeline_mode = #tpu.pipeline_mode<synchronous>, transform_indices = @transform_7, window_bounds = array<i64: 32, 128>}, {pipeline_mode = #tpu.pipeline_mode<synchronous>, transform_indices = @transform_8, window_bounds = array<i64: 1, 128>}, {transform_indices = @transform_9, window_bounds = array<i64: 256, 128>}]} {
    %c0 = arith.constant 0 : index
    %c0_0 = arith.constant 0 : index
    %0 = vector.load %arg1[%c0, %c0_0] : memref<256x16xf32, #tpu.memory_space<vmem>>, vector<256x16xf32>
    %c0_1 = arith.constant 0 : index
    %c0_2 = arith.constant 0 : index
    %1 = vector.load %arg2[%c0_1, %c0_2] : memref<16x32xbf16, #tpu.memory_space<vmem>>, vector<16x32xbf16>
    %c0_3 = arith.constant 0 : index
    %c0_4 = arith.constant 0 : index
    %2 = vector.load %arg3[%c0_3, %c0_4] : memref<1x32xf32, #tpu.memory_space<vmem>>, vector<1x32xf32>
    %3 = arith.truncf %0 : vector<256x16xf32> to vector<256x16xbf16>
    %cst = arith.constant dense<0.000000e+00> : vector<256x32xf32>
    %4 = tpu.matmul %3, %1, %cst {dimension_numbers = #tpu.dot_dimension_numbers<[1], [0], [0], [1], [0, 0, 1, 1], [], []>} : vector<256x16xbf16>, vector<16x32xbf16>, vector<256x32xf32> -> vector<256x32xf32>
    %5 = vector.broadcast %2 : vector<1x32xf32> to vector<256x32xf32>
    %6 = arith.addf %4, %5 : vector<256x32xf32>
    %cst_5 = arith.constant 0.000000e+00 : f32
    %7 = vector.broadcast %cst_5 : f32 to vector<256x32xf32>
    %8 = arith.maximumf %6, %7 : vector<256x32xf32>
    %c0_6 = arith.constant 0 : index
    %c0_7 = arith.constant 0 : index
    %9 = vector.load %arg4[%c0_6, %c0_7] : memref<32x32xbf16, #tpu.memory_space<vmem>>, vector<32x32xbf16>
    %c0_8 = arith.constant 0 : index
    %c0_9 = arith.constant 0 : index
    %10 = vector.load %arg5[%c0_8, %c0_9] : memref<1x32xf32, #tpu.memory_space<vmem>>, vector<1x32xf32>
    %11 = arith.truncf %8 : vector<256x32xf32> to vector<256x32xbf16>
    %cst_10 = arith.constant dense<0.000000e+00> : vector<256x32xf32>
    %12 = tpu.matmul %11, %9, %cst_10 {dimension_numbers = #tpu.dot_dimension_numbers<[1], [0], [0], [1], [0, 0, 1, 1], [], []>} : vector<256x32xbf16>, vector<32x32xbf16>, vector<256x32xf32> -> vector<256x32xf32>
    %13 = vector.broadcast %10 : vector<1x32xf32> to vector<256x32xf32>
    %14 = arith.addf %12, %13 : vector<256x32xf32>
    %cst_11 = arith.constant 0.000000e+00 : f32
    %15 = vector.broadcast %cst_11 : f32 to vector<256x32xf32>
    %16 = arith.maximumf %14, %15 : vector<256x32xf32>
    %c0_12 = arith.constant 0 : index
    %c0_13 = arith.constant 0 : index
    %17 = vector.load %arg6[%c0_12, %c0_13] : memref<32x32xbf16, #tpu.memory_space<vmem>>, vector<32x32xbf16>
    %c0_14 = arith.constant 0 : index
    %c0_15 = arith.constant 0 : index
    %18 = vector.load %arg7[%c0_14, %c0_15] : memref<1x32xf32, #tpu.memory_space<vmem>>, vector<1x32xf32>
    %19 = arith.truncf %16 : vector<256x32xf32> to vector<256x32xbf16>
    %cst_16 = arith.constant dense<0.000000e+00> : vector<256x32xf32>
    %20 = tpu.matmul %19, %17, %cst_16 {dimension_numbers = #tpu.dot_dimension_numbers<[1], [0], [0], [1], [0, 0, 1, 1], [], []>} : vector<256x32xbf16>, vector<32x32xbf16>, vector<256x32xf32> -> vector<256x32xf32>
    %21 = vector.broadcast %18 : vector<1x32xf32> to vector<256x32xf32>
    %22 = arith.addf %20, %21 : vector<256x32xf32>
    %cst_17 = arith.constant 0.000000e+00 : f32
    %23 = vector.broadcast %cst_17 : f32 to vector<256x32xf32>
    %24 = arith.maximumf %22, %23 : vector<256x32xf32>
    %c0_18 = arith.constant 0 : index
    %c0_19 = arith.constant 0 : index
    %25 = vector.load %arg8[%c0_18, %c0_19] : memref<32x128xbf16, #tpu.memory_space<vmem>>, vector<32x128xbf16>
    %c0_20 = arith.constant 0 : index
    %c0_21 = arith.constant 0 : index
    %26 = vector.load %arg9[%c0_20, %c0_21] : memref<1x128xf32, #tpu.memory_space<vmem>>, vector<1x128xf32>
    %27 = arith.truncf %24 : vector<256x32xf32> to vector<256x32xbf16>
    %cst_22 = arith.constant dense<0.000000e+00> : vector<256x128xf32>
    %28 = tpu.matmul %27, %25, %cst_22 {dimension_numbers = #tpu.dot_dimension_numbers<[1], [0], [0], [1], [0, 0, 1, 1], [], []>} : vector<256x32xbf16>, vector<32x128xbf16>, vector<256x128xf32> -> vector<256x128xf32>
    %29 = vector.broadcast %26 : vector<1x128xf32> to vector<256x128xf32>
    %30 = arith.addf %28, %29 : vector<256x128xf32>
    %c0_23 = arith.constant 0 : index
    %c0_24 = arith.constant 0 : index
    %31 = vector.load %arg10[%c0_23, %c0_24] : memref<256x128xf32, #tpu.memory_space<vmem>>, vector<256x128xf32>
    tpu.vector_store %arg10[%c0_23, %c0_24], %30 {strides = array<i32>} : memref<256x128xf32, #tpu.memory_space<vmem>>, vector<256x128xf32>,
    return
  }
  func.func @transform_0(%arg0: i32) -> (i32, i32) {
    %c0_i32 = arith.constant 0 : i32
    %c0_i32_0 = arith.constant 0 : i32
    return %arg0, %c0_i32 : i32, i32
  }
  func.func @transform_1(%arg0: i32) -> (i32, i32) {
    %c0_i32 = arith.constant 0 : i32
    %c0_i32_0 = arith.constant 0 : i32
    %c0_i32_1 = arith.constant 0 : i32
    return %c0_i32, %c0_i32_0 : i32, i32
  }
  func.func @transform_2(%arg0: i32) -> (i32, i32) {
    %c0_i32 = arith.constant 0 : i32
    %c0_i32_0 = arith.constant 0 : i32
    %c0_i32_1 = arith.constant 0 : i32
    return %c0_i32, %c0_i32_0 : i32, i32
  }
  func.func @transform_3(%arg0: i32) -> (i32, i32) {
    %c0_i32 = arith.constant 0 : i32
    %c0_i32_0 = arith.constant 0 : i32
    %c0_i32_1 = arith.constant 0 : i32
    return %c0_i32, %c0_i32_0 : i32, i32
  }
  func.func @transform_4(%arg0: i32) -> (i32, i32) {
    %c0_i32 = arith.constant 0 : i32
    %c0_i32_0 = arith.constant 0 : i32
    %c0_i32_1 = arith.constant 0 : i32
    return %c0_i32, %c0_i32_0 : i32, i32
  }
  func.func @transform_5(%arg0: i32) -> (i32, i32) {
    %c0_i32 = arith.constant 0 : i32
    %c0_i32_0 = arith.constant 0 : i32
    %c0_i32_1 = arith.constant 0 : i32
    return %c0_i32, %c0_i32_0 : i32, i32
  }
  func.func @transform_6(%arg0: i32) -> (i32, i32) {
    %c0_i32 = arith.constant 0 : i32
    %c0_i32_0 = arith.constant 0 : i32
    %c0_i32_1 = arith.constant 0 : i32
    return %c0_i32, %c0_i32_0 : i32, i32
  }
  func.func @transform_7(%arg0: i32) -> (i32, i32) {
    %c0_i32 = arith.constant 0 : i32
    %c0_i32_0 = arith.constant 0 : i32
    %c0_i32_1 = arith.constant 0 : i32
    return %c0_i32, %c0_i32_0 : i32, i32
  }
  func.func @transform_8(%arg0: i32) -> (i32, i32) {
    %c0_i32 = arith.constant 0 : i32
    %c0_i32_0 = arith.constant 0 : i32
    %c0_i32_1 = arith.constant 0 : i32
    return %c0_i32, %c0_i32_0 : i32, i32
  }
  func.func @transform_9(%arg0: i32) -> (i32, i32) {
    %c0_i32 = arith.constant 0 : i32
    %c0_i32_0 = arith.constant 0 : i32
    return %arg0, %c0_i32 : i32, i32
  }
}

</mosaic_0001>

<bundles_post_ra>
// kernel: mlp_forward.1
= control target key start
LH: loop header
LB: loop body
LE: loop exit
PB: predicated region body
PF: predicated region fallthrough
CT: control target
= control target key end

     0   :  { %vm96_vm0 = vcmask 130048   ;;  %vm377_vm1 = vcmask 261120   ;;  %s1953_s1 = inlined_call_operand.vmem [shape: bf16[16,32], index: 1, kind: input, shape index: {}]   ;;  %s1954_s0 = inlined_call_operand.vmem [shape: f32[256,16], index: 0, kind: input, shape index: {}]   ;;  %s1955_s3 = inlined_call_operand.vmem [shape: bf16[32,32], index: 3, kind: input, shape index: {}]   ;;  %s1956_s5 = inlined_call_operand.vmem [shape: bf16[32,32], index: 5, kind: input, shape index: {}]   ;;  %s1957_s2 = inlined_call_operand.vmem [shape: f32[1,32], index: 2, kind: input, shape index: {}]   ;;  %s1958_s7 = inlined_call_operand.vmem [shape: bf16[32,128], index: 7, kind: input, shape index: {}]   ;;  %s1959_s4 = inlined_call_operand.vmem [shape: f32[1,32], index: 4, kind: input, shape index: {}]   ;;  %s1960_s6 = inlined_call_operand.vmem [shape: f32[1,32], index: 6, kind: input, shape index: {}]   ;;  %s1961_s8 = inlined_call_operand.vmem [shape: f32[1,128], index: 8, kind: input, shape index: {}]   ;;  %s1962_s9 = inlined_call_operand.vmem [shape: f32[256,128], index: 9, kind: output, shape index: {}]  }
   0x1   :  { %v1471_v0 = vld [vmem:[%s1953_s1] sm:$0xff]   ;;  %v34_v2 = vld [vmem:[%s1954_s0 + $0x8] sm:$0xff]  ;;  %v35_v3 = vld [vmem:[%s1954_s0 + $0x10] sm:$0xff] }
   0x2   :  { %v33_v1 = vld [vmem:[%s1954_s0] sm:$0xff]  ;;  %1329 = vmatprep.subr.bf16.mxu0 %v1471_v0  ;;  %v36_v5 = vld [vmem:[%s1954_s0 + $0x18] sm:$0xff]  ;;  %v38_v7 = vld [vmem:[%s1954_s0 + $0x28] sm:$0xff] }
   0x3   :  { %v68_v4 = vpack.c.bf16 %v34_v2, %v33_v1  ;;  %v37_v6 = vld [vmem:[%s1954_s0 + $0x20] sm:$0xff]  ;;  %1330 = vmatpush3.bf16.msra.mxu0 %v1471_v0  ;;  %v69_v8 = vpack.c.bf16 %v36_v5, %v35_v3  ;;  %v39_v10 = vld [vmem:[%s1954_s0 + $0x30] sm:$0xff]  ;;  %v40_v11 = vld [vmem:[%s1954_s0 + $0x38] sm:$0xff] }
   0x4   :  { %v70_v9 = vpack.c.bf16 %v38_v7, %v37_v6  ;;  %v41_v12 = vld [vmem:[%s1954_s0 + $0x40] sm:$0xff]  ;;  %v42_v13 = vld [vmem:[%s1954_s0 + $0x48] sm:$0xff]  ;;  %v71_v14 = vpack.c.bf16 %v40_v11, %v39_v10  ;;  %v43_v16 = vld [vmem:[%s1954_s0 + $0x50] sm:$0xff] }
   0x5   :  { %1331 = vmatprep.mubr.msk.bf16.mxu0 %vm96_vm0, %v68_v4  ;;  %v72_v15 = vpack.c.bf16 %v42_v13, %v41_v12  ;;  %v44_v17 = vld [vmem:[%s1954_s0 + $0x58] sm:$0xff]  ;;  %v45_v18 = vld [vmem:[%s1954_s0 + $0x60] sm:$0xff]  ;;  %v46_v19 = vld [vmem:[%s1954_s0 + $0x68] sm:$0xff] }
   0x6   :  { %1332 = vmatmul.mubr.msk.bf16.vlgmr.msra.gmra.mrb[0].mxu0 %vm96_vm0, %v69_v8  ;;  %v73_v20 = vpack.c.bf16 %v44_v17, %v43_v16  ;;  %v74_v21 = vpack.c.bf16 %v46_v19, %v45_v18  ;;  %v47_v22 = vld [vmem:[%s1954_s0 + $0x70] sm:$0xff]  ;;  %v48_v23 = vld [vmem:[%s1954_s0 + $0x78] sm:$0xff]  ;;  %v49_v24 = vld [vmem:[%s1954_s0 + $0x80] sm:$0xff] }
   0x7   :  { %1335 = vmatprep.mubr.msk.bf16.mxu0 %vm96_vm0, %v70_v9  ;;  %v50_v25 = vld [vmem:[%s1954_s0 + $0x88] sm:$0xff]  ;;  %v75_v26 = vpack.c.bf16 %v48_v23, %v47_v22  ;;  %v51_v28 = vld [vmem:[%s1954_s0 + $0x90] sm:$0xff]  ;;  %v52_v29 = vld [vmem:[%s1954_s0 + $0x98] sm:$0xff] }
   0x8   :  { %v76_v27 = vpack.c.bf16 %v50_v25, %v49_v24  ;;  %v53_v30 = vld [vmem:[%s1954_s0 + $0xa0] sm:$0xff]  ;;  %v54_v31 = vld [vmem:[%s1954_s0 + $0xa8] sm:$0xff]  ;;  %v77_v32 = vpack.c.bf16 %v52_v29, %v51_v28  ;;  %v55_v34 = vld [vmem:[%s1954_s0 + $0xb0] sm:$0xff] }
   0x9   :  { %v78_v33 = vpack.c.bf16 %v54_v31, %v53_v30  ;;  %v56_v35 = vld [vmem:[%s1954_s0 + $0xb8] sm:$0xff]  ;;  %v57_v36 = vld [vmem:[%s1954_s0 + $0xc0] sm:$0xff]  ;;  %v58_v37 = vld [vmem:[%s1954_s0 + $0xc8] sm:$0xff] }
   0xa   :  { %v79_v38 = vpack.c.bf16 %v56_v35, %v55_v34  ;;  %v80_v39 = vpack.c.bf16 %v58_v37, %v57_v36  ;;  %v59_v40 = vld [vmem:[%s1954_s0 + $0xd0] sm:$0xff]  ;;  %v60_v41 = vld [vmem:[%s1954_s0 + $0xd8] sm:$0xff]  ;;  %v61_v42 = vld [vmem:[%s1954_s0 + $0xe0] sm:$0xff] }
   0xb   :  { %v62_v43 = vld [vmem:[%s1954_s0 + $0xe8] sm:$0xff]  ;;  %v81_v44 = vpack.c.bf16 %v60_v41, %v59_v40  ;;  %v63_v46 = vld [vmem:[%s1954_s0 + $0xf0] sm:$0xff]  ;;  %v64_v47 = vld [vmem:[%s1954_s0 + $0xf8] sm:$0xff] }
   0xc   :  { %v82_v45 = vpack.c.bf16 %v62_v43, %v61_v42  ;;  %v83_v48 = vpack.c.bf16 %v64_v47, %v63_v46  ;;  %v1472_v49 = vld [vmem:[%s1955_s3] sm:$0xff]   ;;  %v1473_v50 = vld [vmem:[%s1955_s3 + $0x8] sm:$0xff]  }
   0xd   :  { %1363 = vmatprep.subr.bf16.mxu1 %v1472_v49  ;;  %v1474_v51 = vld [vmem:[%s1956_s5] sm:$0xff]   ;;  %v1475_v52 = vld [vmem:[%s1956_s5 + $0x8] sm:$0xff]  }
   0xe   :  { %1336 = vmatmul.mubr.msk.bf16.gmra.mrb[4].mxu0 %vm96_vm0, %v71_v14  ;;  %1364 = vmatpush3.bf16.msra.mxu1 %v1472_v49  ;;  %v1658_v53 = vld [vmem:[%s1957_s2] ss:$0 sm:$0xff] }
   0xf   :  { %1339 = vmatprep.mubr.msk.bf16.mxu0 %vm96_vm0, %v72_v15  ;;  %1365 = vmatprep.subr.bf16.mxu1 %v1473_v50 }
  0x10   :  { %1399 = vmatprep.subr.bf16.mxu0 %v1474_v51 }
  0x11   :  { %1400 = vmatpush3.bf16.msra.mxu0 %v1474_v51 }
  0x12   :  { %1366 = vmatpush3.bf16.msra.mxu1 %v1473_v50  ;;  %1401 = vmatprep.subr.bf16.mxu0 %v1475_v52 }
  0x15   :  { %1402 = vmatpush3.bf16.msra.mxu0 %v1475_v52 }
  0x16   :  { %1340 = vmatmul.mubr.msk.bf16.gmra.mrb[8].mxu0 %vm96_vm0, %v73_v20 }
  0x17   :  { %1343 = vmatprep.mubr.msk.bf16.mxu0 %vm96_vm0, %v74_v21 }
  0x1e   :  { %1344 = vmatmul.mubr.msk.bf16.gmra.mrb[12].mxu0 %vm96_vm0, %v75_v26 }
  0x1f   :  { %1347 = vmatprep.mubr.msk.bf16.mxu0 %vm96_vm0, %v76_v27 }
  0x26   :  { %1348 = vmatmul.mubr.msk.bf16.gmra.mrb[16].mxu0 %vm96_vm0, %v77_v32 }
  0x27   :  { %1351 = vmatprep.mubr.msk.bf16.mxu0 %vm96_vm0, %v78_v33 }
  0x2e   :  { %1352 = vmatmul.mubr.msk.bf16.gmra.mrb[20].mxu0 %vm96_vm0, %v79_v38 }
  0x2f   :  { %1355 = vmatprep.mubr.msk.bf16.mxu0 %vm96_vm0, %v80_v39 }
  0x36   :  { %1356 = vmatmul.mubr.msk.bf16.gmra.mrb[24].mxu0 %vm96_vm0, %v81_v44 }
  0x37   :  { %1359 = vmatprep.mubr.msk.bf16.mxu0 %vm96_vm0, %v82_v45 }
  0x3e   :  { %1360 = vmatmul.mubr.msk.bf16.gmra.mrb[28].mxu0 %vm96_vm0, %v83_v48 }
  0xd9   :  { %v1333_v54 = vpop.f32.mrb[0].mxu0 }
  0xda   :  { %v188_v55 = vadd.f32 %v1333_v54, %v1658_v53  ;;  %v179_v56 = vpop.f32.mrb[1].mxu0 }
  0xdb   :  { %v180_v57 = vadd.f32 %v1658_v53, %v179_v56  ;;  %v1334_v58 = vpop.f32.mrb[2].mxu0 }
  0xdc   :  { %v191_v59 = vadd.f32 %v1334_v58, %v1658_v53  ;;  %v182_v60 = vpop.f32.mrb[3].mxu0  ;;  %v308_v62 = vmax.f32 %v188_v55, 0.0 }
  0xdd   :  { %v183_v61 = vadd.f32 %v1658_v53, %v182_v60  ;;  %v306_v0 = vmax.f32 %v180_v57, 0.0 }
  0xde   :  { %v309_v63 = vmax.f32 %v191_v59, 0.0 }
  0xdf   :  { %v307_v1 = vmax.f32 %v183_v61, 0.0 }
  0xe0   :  { %v344_v2 = vpack.c.bf16 %v309_v63, %v308_v62 }
  0xe1   :  { %v1337_v3 = vpop.f32.mrb[4].mxu0  ;;  %v343_v4 = vpack.c.bf16 %v307_v1, %v306_v0 }
  0xe2   :  { %v204_v5 = vadd.f32 %v1337_v3, %v1658_v53  ;;  %v195_v6 = vpop.f32.mrb[5].mxu0 }
  0xe3   :  { %v196_v7 = vadd.f32 %v1658_v53, %v195_v6  ;;  %v1338_v8 = vpop.f32.mrb[6].mxu0  ;;  %1367 = vmatprep.mubr.msk.bf16.mxu1 %vm377_vm1, %v343_v4 }
  0xe4   :  { %v207_v9 = vadd.f32 %v1338_v8, %v1658_v53  ;;  %v198_v10 = vpop.f32.mrb[7].mxu0  ;;  %1368 = vmatmul.mubr.msk.bf16.vlgmr.msra.gmra.mrb[0].mxu1 %vm377_vm1, %v344_v2  ;;  %v312_v12 = vmax.f32 %v204_v5, 0.0 }
  0xe5   :  { %v199_v11 = vadd.f32 %v1658_v53, %v198_v10  ;;  %v310_v14 = vmax.f32 %v196_v7, 0.0 }
  0xe6   :  { %v313_v13 = vmax.f32 %v207_v9, 0.0 }
  0xe7   :  { %v311_v15 = vmax.f32 %v199_v11, 0.0 }
  0xe8   :  { %v346_v16 = vpack.c.bf16 %v313_v13, %v312_v12 }
  0xe9   :  { %v345_v17 = vpack.c.bf16 %v311_v15, %v310_v14  ;;  %v1341_v18 = vpop.f32.mrb[8].mxu0 }
  0xea   :  { %v220_v19 = vadd.f32 %v1341_v18, %v1658_v53  ;;  %v211_v20 = vpop.f32.mrb[9].mxu0 }
  0xeb   :  { %v212_v21 = vadd.f32 %v1658_v53, %v211_v20  ;;  %v1342_v22 = vpop.f32.mrb[10].mxu0  ;;  %1371 = vmatprep.mubr.msk.bf16.mxu1 %vm377_vm1, %v345_v17 }
  0xec   :  { %v223_v23 = vadd.f32 %v1342_v22, %v1658_v53  ;;  %v214_v24 = vpop.f32.mrb[11].mxu0  ;;  %1372 = vmatmul.mubr.msk.bf16.gmra.mrb[4].mxu1 %vm377_vm1, %v346_v16  ;;  %v316_v26 = vmax.f32 %v220_v19, 0.0 }
  0xed   :  { %v215_v25 = vadd.f32 %v1658_v53, %v214_v24  ;;  %v314_v28 = vmax.f32 %v212_v21, 0.0 }
  0xee   :  { %v317_v27 = vmax.f32 %v223_v23, 0.0 }
  0xef   :  { %v315_v29 = vmax.f32 %v215_v25, 0.0 }
  0xf0   :  { %v348_v30 = vpack.c.bf16 %v317_v27, %v316_v26 }
  0xf1   :  { %v347_v31 = vpack.c.bf16 %v315_v29, %v314_v28  ;;  %v1345_v32 = vpop.f32.mrb[12].mxu0 }
  0xf2   :  { %v236_v33 = vadd.f32 %v1345_v32, %v1658_v53  ;;  %v227_v34 = vpop.f32.mrb[13].mxu0 }
  0xf3   :  { %v228_v35 = vadd.f32 %v1658_v53, %v227_v34  ;;  %v1346_v36 = vpop.f32.mrb[14].mxu0  ;;  %1375 = vmatprep.mubr.msk.bf16.mxu1 %vm377_vm1, %v347_v31 }
  0xf4   :  { %v239_v37 = vadd.f32 %v1346_v36, %v1658_v53  ;;  %v230_v38 = vpop.f32.mrb[15].mxu0  ;;  %1376 = vmatmul.mubr.msk.bf16.gmra.mrb[8].mxu1 %vm377_vm1, %v348_v30  ;;  %v320_v40 = vmax.f32 %v236_v33, 0.0 }
  0xf5   :  { %v231_v39 = vadd.f32 %v1658_v53, %v230_v38  ;;  %v318_v42 = vmax.f32 %v228_v35, 0.0 }
  0xf6   :  { %v321_v41 = vmax.f32 %v239_v37, 0.0 }
  0xf7   :  { %v319_v43 = vmax.f32 %v231_v39, 0.0  ;;  %v1476_v39 = vld [vmem:[%s1958_s7] sm:$0xff]  }
  0xf8   :  { %v350_v44 = vpack.c.bf16 %v321_v41, %v320_v40  ;;  %v1477_v40 = vld [vmem:[%s1958_s7 + $0x8] sm:$0xff]   ;;  %1435 = vmatprep.subr.bf16.mxu1 %v1476_v39 }
  0xf9   :  { %v349_v45 = vpack.c.bf16 %v319_v43, %v318_v42  ;;  %v1349_v46 = vpop.f32.mrb[16].mxu0  ;;  %1436 = vmatpush3.bf16.msra.mxu1 %v1476_v39 }
  0xfa   :  { %v252_v47 = vadd.f32 %v1349_v46, %v1658_v53  ;;  %v243_v48 = vpop.f32.mrb[17].mxu0  ;;  %1437 = vmatprep.subr.bf16.mxu1 %v1477_v40 }
  0xfb   :  { %v244_v49 = vadd.f32 %v1658_v53, %v243_v48  ;;  %v1350_v50 = vpop.f32.mrb[18].mxu0  ;;  %1379 = vmatprep.mubr.msk.bf16.mxu1 %vm377_vm1, %v349_v45 }
  0xfc   :  { %v255_v51 = vadd.f32 %v1350_v50, %v1658_v53  ;;  %v246_v52 = vpop.f32.mrb[19].mxu0  ;;  %1380 = vmatmul.mubr.msk.bf16.gmra.mrb[12].mxu1 %vm377_vm1, %v350_v44  ;;  %v324_v55 = vmax.f32 %v252_v47, 0.0 }
  0xfd   :  { %v247_v54 = vadd.f32 %v1658_v53, %v246_v52  ;;  %v322_v57 = vmax.f32 %v244_v49, 0.0  ;;  %1438 = vmatpush3.bf16.msra.mxu1 %v1477_v40 }
  0xfe   :  { %v325_v56 = vmax.f32 %v255_v51, 0.0 }
  0xff   :  { %v323_v58 = vmax.f32 %v247_v54, 0.0 }
 0x100   :  { %v352_v59 = vpack.c.bf16 %v325_v56, %v324_v55 }
 0x101   :  { %v351_v60 = vpack.c.bf16 %v323_v58, %v322_v57  ;;  %v1353_v61 = vpop.f32.mrb[20].mxu0 }
 0x102   :  { %v268_v62 = vadd.f32 %v1353_v61, %v1658_v53  ;;  %v259_v63 = vpop.f32.mrb[21].mxu0 }
 0x103   :  { %v260_v0 = vadd.f32 %v1658_v53, %v259_v63  ;;  %v1354_v1 = vpop.f32.mrb[22].mxu0  ;;  %1383 = vmatprep.mubr.msk.bf16.mxu1 %vm377_vm1, %v351_v60 }
 0x104   :  { %v271_v2 = vadd.f32 %v1354_v1, %v1658_v53  ;;  %v262_v3 = vpop.f32.mrb[23].mxu0  ;;  %1384 = vmatmul.mubr.msk.bf16.gmra.mrb[16].mxu1 %vm377_vm1, %v352_v59  ;;  %v328_v5 = vmax.f32 %v268_v62, 0.0 }
 0x105   :  { %v263_v4 = vadd.f32 %v1658_v53, %v262_v3  ;;  %v326_v7 = vmax.f32 %v260_v0, 0.0 }
 0x106   :  { %v329_v6 = vmax.f32 %v271_v2, 0.0 }
 0x107   :  { %v327_v8 = vmax.f32 %v263_v4, 0.0 }
 0x108   :  { %v354_v9 = vpack.c.bf16 %v329_v6, %v328_v5 }
 0x109   :  { %v353_v10 = vpack.c.bf16 %v327_v8, %v326_v7  ;;  %v1357_v11 = vpop.f32.mrb[24].mxu0 }
 0x10a   :  { %v284_v12 = vadd.f32 %v1357_v11, %v1658_v53  ;;  %v275_v13 = vpop.f32.mrb[25].mxu0 }
 0x10b   :  { %v276_v14 = vadd.f32 %v1658_v53, %v275_v13  ;;  %v1358_v15 = vpop.f32.mrb[26].mxu0  ;;  %1387 = vmatprep.mubr.msk.bf16.mxu1 %vm377_vm1, %v353_v10 }
 0x10c   :  { %v287_v16 = vadd.f32 %v1358_v15, %v1658_v53  ;;  %v278_v17 = vpop.f32.mrb[27].mxu0  ;;  %1388 = vmatmul.mubr.msk.bf16.gmra.mrb[20].mxu1 %vm377_vm1, %v354_v9  ;;  %v332_v19 = vmax.f32 %v284_v12, 0.0 }
 0x10d   :  { %v279_v18 = vadd.f32 %v1658_v53, %v278_v17  ;;  %v330_v21 = vmax.f32 %v276_v14, 0.0 }
 0x10e   :  { %v333_v20 = vmax.f32 %v287_v16, 0.0 }
 0x10f   :  { %v331_v22 = vmax.f32 %v279_v18, 0.0 }
 0x110   :  { %v356_v23 = vpack.c.bf16 %v333_v20, %v332_v19 }
 0x111   :  { %v355_v24 = vpack.c.bf16 %v331_v22, %v330_v21  ;;  %v1361_v25 = vpop.f32.mrb[28].mxu0 }
 0x112   :  { %v300_v26 = vadd.f32 %v1361_v25, %v1658_v53  ;;  %v291_v27 = vpop.f32.mrb[29].mxu0 }
 0x113   :  { %v292_v28 = vadd.f32 %v1658_v53, %v291_v27  ;;  %v1362_v29 = vpop.f32.mrb[30].mxu0  ;;  %1391 = vmatprep.mubr.msk.bf16.mxu1 %vm377_vm1, %v355_v24 }
 0x114   :  { %v303_v30 = vadd.f32 %v1362_v29, %v1658_v53  ;;  %v294_v31 = vpop.f32.mrb[31].mxu0  ;;  %1392 = vmatmul.mubr.msk.bf16.gmra.mrb[24].mxu1 %vm377_vm1, %v356_v23  ;;  %v336_v33 = vmax.f32 %v300_v26, 0.0 }
 0x115   :  { %v295_v32 = vadd.f32 %v1658_v53, %v294_v31  ;;  %v334_v35 = vmax.f32 %v292_v28, 0.0  ;;  %v1717_v53 = vld [vmem:[%s1959_s4] ss:$0 sm:$0xff] }
 0x116   :  { %v337_v34 = vmax.f32 %v303_v30, 0.0 }
 0x117   :  { %v335_v36 = vmax.f32 %v295_v32, 0.0 }
 0x118   :  { %v358_v37 = vpack.c.bf16 %v337_v34, %v336_v33 }
 0x119   :  { %v357_v38 = vpack.c.bf16 %v335_v36, %v334_v35 }
 0x11b   :  { %1395 = vmatprep.mubr.msk.bf16.mxu1 %vm377_vm1, %v357_v38 }
 0x11c   :  { %1396 = vmatmul.mubr.msk.bf16.gmra.mrb[28].mxu1 %vm377_vm1, %v358_v37 }
 0x1b7   :  { %v1369_v41 = vpop.f32.mrb[0].mxu1 }
 0x1b8   :  { %v469_v42 = vadd.f32 %v1369_v41, %v1717_v53  ;;  %v460_v43 = vpop.f32.mrb[1].mxu1 }
 0x1b9   :  { %v461_v44 = vadd.f32 %v1717_v53, %v460_v43  ;;  %v1370_v45 = vpop.f32.mrb[2].mxu1 }
 0x1ba   :  { %v472_v46 = vadd.f32 %v1370_v45, %v1717_v53  ;;  %v463_v47 = vpop.f32.mrb[3].mxu1  ;;  %v589_v49 = vmax.f32 %v469_v42, 0.0 }
 0x1bb   :  { %v464_v48 = vadd.f32 %v1717_v53, %v463_v47  ;;  %v587_v51 = vmax.f32 %v461_v44, 0.0 }
 0x1bc   :  { %v590_v50 = vmax.f32 %v472_v46, 0.0 }
 0x1bd   :  { %v588_v52 = vmax.f32 %v464_v48, 0.0 }
 0x1be   :  { %v625_v54 = vpack.c.bf16 %v590_v50, %v589_v49 }
 0x1bf   :  { %v624_v55 = vpack.c.bf16 %v588_v52, %v587_v51  ;;  %v1373_v56 = vpop.f32.mrb[4].mxu1 }
 0x1c0   :  { %v485_v57 = vadd.f32 %v1373_v56, %v1717_v53  ;;  %v476_v58 = vpop.f32.mrb[5].mxu1 }
 0x1c1   :  { %v477_v59 = vadd.f32 %v1717_v53, %v476_v58  ;;  %v1374_v60 = vpop.f32.mrb[6].mxu1  ;;  %1403 = vmatprep.mubr.msk.bf16.mxu0 %vm377_vm1, %v624_v55 }
 0x1c2   :  { %v488_v61 = vadd.f32 %v1374_v60, %v1717_v53  ;;  %v479_v62 = vpop.f32.mrb[7].mxu1  ;;  %1404 = vmatmul.mubr.msk.bf16.vlgmr.msra.gmra.mrb[32].mxu0 %vm377_vm1, %v625_v54  ;;  %v593_v0 = vmax.f32 %v485_v57, 0.0 }
 0x1c3   :  { %v480_v63 = vadd.f32 %v1717_v53, %v479_v62  ;;  %v591_v2 = vmax.f32 %v477_v59, 0.0 }
 0x1c4   :  { %v594_v1 = vmax.f32 %v488_v61, 0.0 }
 0x1c5   :  { %v592_v3 = vmax.f32 %v480_v63, 0.0 }
 0x1c6   :  { %v627_v4 = vpack.c.bf16 %v594_v1, %v593_v0 }
 0x1c7   :  { %v626_v5 = vpack.c.bf16 %v592_v3, %v591_v2  ;;  %v1377_v6 = vpop.f32.mrb[8].mxu1 }
 0x1c8   :  { %v501_v7 = vadd.f32 %v1377_v6, %v1717_v53  ;;  %v492_v8 = vpop.f32.mrb[9].mxu1 }
 0x1c9   :  { %v493_v9 = vadd.f32 %v1717_v53, %v492_v8  ;;  %v1378_v10 = vpop.f32.mrb[10].mxu1  ;;  %1407 = vmatprep.mubr.msk.bf16.mxu0 %vm377_vm1, %v626_v5 }
 0x1ca   :  { %v504_v11 = vadd.f32 %v1378_v10, %v1717_v53  ;;  %v495_v12 = vpop.f32.mrb[11].mxu1  ;;  %1408 = vmatmul.mubr.msk.bf16.gmra.mrb[36].mxu0 %vm377_vm1, %v627_v4  ;;  %v597_v14 = vmax.f32 %v501_v7, 0.0 }
 0x1cb   :  { %v496_v13 = vadd.f32 %v1717_v53, %v495_v12  ;;  %v595_v16 = vmax.f32 %v493_v9, 0.0 }
 0x1cc   :  { %v598_v15 = vmax.f32 %v504_v11, 0.0 }
 0x1cd   :  { %v596_v17 = vmax.f32 %v496_v13, 0.0 }
 0x1ce   :  { %v629_v18 = vpack.c.bf16 %v598_v15, %v597_v14 }
 0x1cf   :  { %v628_v19 = vpack.c.bf16 %v596_v17, %v595_v16  ;;  %v1381_v20 = vpop.f32.mrb[12].mxu1 }
 0x1d0   :  { %v517_v21 = vadd.f32 %v1381_v20, %v1717_v53  ;;  %v508_v22 = vpop.f32.mrb[13].mxu1 }
 0x1d1   :  { %v509_v23 = vadd.f32 %v1717_v53, %v508_v22  ;;  %v1382_v24 = vpop.f32.mrb[14].mxu1  ;;  %1411 = vmatprep.mubr.msk.bf16.mxu0 %vm377_vm1, %v628_v19 }
 0x1d2   :  { %v520_v25 = vadd.f32 %v1382_v24, %v1717_v53  ;;  %v511_v26 = vpop.f32.mrb[15].mxu1  ;;  %1412 = vmatmul.mubr.msk.bf16.gmra.mrb[40].mxu0 %vm377_vm1, %v629_v18  ;;  %v601_v28 = vmax.f32 %v517_v21, 0.0 }
 0x1d3   :  { %v512_v27 = vadd.f32 %v1717_v53, %v511_v26  ;;  %v599_v30 = vmax.f32 %v509_v23, 0.0 }
 0x1d4   :  { %v602_v29 = vmax.f32 %v520_v25, 0.0 }
 0x1d5   :  { %v600_v31 = vmax.f32 %v512_v27, 0.0  ;;  %v1770_v27 = vld [vmem:[%s1960_s6] ss:$0 sm:$0xff] }
 0x1d6   :  { %v631_v32 = vpack.c.bf16 %v602_v29, %v601_v28 }
 0x1d7   :  { %v630_v33 = vpack.c.bf16 %v600_v31, %v599_v30  ;;  %v1385_v34 = vpop.f32.mrb[16].mxu1 }
 0x1d8   :  { %v533_v35 = vadd.f32 %v1385_v34, %v1717_v53  ;;  %v524_v36 = vpop.f32.mrb[17].mxu1 }
 0x1d9   :  { %v525_v37 = vadd.f32 %v1717_v53, %v524_v36  ;;  %v1386_v38 = vpop.f32.mrb[18].mxu1  ;;  %1415 = vmatprep.mubr.msk.bf16.mxu0 %vm377_vm1, %v630_v33 }
 0x1da   :  { %v536_v39 = vadd.f32 %v1386_v38, %v1717_v53  ;;  %v527_v40 = vpop.f32.mrb[19].mxu1  ;;  %1416 = vmatmul.mubr.msk.bf16.gmra.mrb[44].mxu0 %vm377_vm1, %v631_v32  ;;  %v605_v42 = vmax.f32 %v533_v35, 0.0 }
 0x1db   :  { %v528_v41 = vadd.f32 %v1717_v53, %v527_v40  ;;  %v603_v44 = vmax.f32 %v525_v37, 0.0 }
 0x1dc   :  { %v606_v43 = vmax.f32 %v536_v39, 0.0 }
 0x1dd   :  { %v604_v45 = vmax.f32 %v528_v41, 0.0 }
 0x1de   :  { %v633_v46 = vpack.c.bf16 %v606_v43, %v605_v42 }
 0x1df   :  { %v632_v47 = vpack.c.bf16 %v604_v45, %v603_v44  ;;  %v1389_v48 = vpop.f32.mrb[20].mxu1 }
 0x1e0   :  { %v549_v49 = vadd.f32 %v1389_v48, %v1717_v53  ;;  %v540_v50 = vpop.f32.mrb[21].mxu1 }
 0x1e1   :  { %v541_v51 = vadd.f32 %v1717_v53, %v540_v50  ;;  %v1390_v52 = vpop.f32.mrb[22].mxu1  ;;  %1419 = vmatprep.mubr.msk.bf16.mxu0 %vm377_vm1, %v632_v47 }
 0x1e2   :  { %v552_v54 = vadd.f32 %v1390_v52, %v1717_v53  ;;  %v543_v55 = vpop.f32.mrb[23].mxu1  ;;  %1420 = vmatmul.mubr.msk.bf16.gmra.mrb[48].mxu0 %vm377_vm1, %v633_v46  ;;  %v609_v57 = vmax.f32 %v549_v49, 0.0 }
 0x1e3   :  { %v544_v56 = vadd.f32 %v1717_v53, %v543_v55  ;;  %v607_v59 = vmax.f32 %v541_v51, 0.0 }
 0x1e4   :  { %v610_v58 = vmax.f32 %v552_v54, 0.0 }
 0x1e5   :  { %v608_v60 = vmax.f32 %v544_v56, 0.0 }
 0x1e6   :  { %v635_v61 = vpack.c.bf16 %v610_v58, %v609_v57 }
 0x1e7   :  { %v634_v62 = vpack.c.bf16 %v608_v60, %v607_v59  ;;  %v1393_v63 = vpop.f32.mrb[24].mxu1 }
 0x1e8   :  { %v565_v0 = vadd.f32 %v1393_v63, %v1717_v53  ;;  %v556_v1 = vpop.f32.mrb[25].mxu1 }
 0x1e9   :  { %v557_v2 = vadd.f32 %v1717_v53, %v556_v1  ;;  %v1394_v3 = vpop.f32.mrb[26].mxu1  ;;  %1423 = vmatprep.mubr.msk.bf16.mxu0 %vm377_vm1, %v634_v62 }
 0x1ea   :  { %v568_v4 = vadd.f32 %v1394_v3, %v1717_v53  ;;  %v559_v5 = vpop.f32.mrb[27].mxu1  ;;  %1424 = vmatmul.mubr.msk.bf16.gmra.mrb[52].mxu0 %vm377_vm1, %v635_v61  ;;  %v613_v7 = vmax.f32 %v565_v0, 0.0 }
 0x1eb   :  { %v560_v6 = vadd.f32 %v1717_v53, %v559_v5  ;;  %v611_v9 = vmax.f32 %v557_v2, 0.0 }
 0x1ec   :  { %v614_v8 = vmax.f32 %v568_v4, 0.0 }
 0x1ed   :  { %v612_v10 = vmax.f32 %v560_v6, 0.0 }
 0x1ee   :  { %v637_v11 = vpack.c.bf16 %v614_v8, %v613_v7 }
 0x1ef   :  { %v636_v12 = vpack.c.bf16 %v612_v10, %v611_v9  ;;  %v1397_v13 = vpop.f32.mrb[28].mxu1 }
 0x1f0   :  { %v581_v14 = vadd.f32 %v1397_v13, %v1717_v53  ;;  %v572_v15 = vpop.f32.mrb[29].mxu1 }
 0x1f1   :  { %v573_v16 = vadd.f32 %v1717_v53, %v572_v15  ;;  %v1398_v17 = vpop.f32.mrb[30].mxu1  ;;  %1427 = vmatprep.mubr.msk.bf16.mxu0 %vm377_vm1, %v636_v12 }
 0x1f2   :  { %v584_v18 = vadd.f32 %v1398_v17, %v1717_v53  ;;  %v575_v19 = vpop.f32.mrb[31].mxu1  ;;  %1428 = vmatmul.mubr.msk.bf16.gmra.mrb[56].mxu0 %vm377_vm1, %v637_v11  ;;  %v617_v21 = vmax.f32 %v581_v14, 0.0 }
 0x1f3   :  { %v576_v20 = vadd.f32 %v1717_v53, %v575_v19  ;;  %v615_v23 = vmax.f32 %v573_v16, 0.0 }
 0x1f4   :  { %v618_v22 = vmax.f32 %v584_v18, 0.0 }
 0x1f5   :  { %v616_v24 = vmax.f32 %v576_v20, 0.0 }
 0x1f6   :  { %v639_v25 = vpack.c.bf16 %v618_v22, %v617_v21 }
 0x1f7   :  { %v638_v26 = vpack.c.bf16 %v616_v24, %v615_v23 }
 0x1f9   :  { %1431 = vmatprep.mubr.msk.bf16.mxu0 %vm377_vm1, %v638_v26 }
 0x1fa   :  { %1432 = vmatmul.mubr.msk.bf16.gmra.mrb[60].mxu0 %vm377_vm1, %v639_v25 }
 0x295   :  { %v1405_v28 = vpop.f32.mrb[32].mxu0 }
 0x296   :  { %v749_v29 = vadd.f32 %v1405_v28, %v1770_v27  ;;  %v740_v30 = vpop.f32.mrb[33].mxu0 }
 0x297   :  { %v741_v53 = vadd.f32 %v1770_v27, %v740_v30  ;;  %v1406_v31 = vpop.f32.mrb[34].mxu0 }
 0x298   :  { %v752_v32 = vadd.f32 %v1406_v31, %v1770_v27  ;;  %v743_v33 = vpop.f32.mrb[35].mxu0  ;;  %v869_v35 = vmax.f32 %v749_v29, 0.0 }
 0x299   :  { %v744_v34 = vadd.f32 %v1770_v27, %v743_v33  ;;  %v867_v37 = vmax.f32 %v741_v53, 0.0 }
 0x29a   :  { %v870_v36 = vmax.f32 %v752_v32, 0.0 }
 0x29b   :  { %v868_v38 = vmax.f32 %v744_v34, 0.0 }
 0x29c   :  { %v905_v39 = vpack.c.bf16 %v870_v36, %v869_v35 }
 0x29d   :  { %v904_v40 = vpack.c.bf16 %v868_v38, %v867_v37  ;;  %v1409_v41 = vpop.f32.mrb[36].mxu0 }
 0x29e   :  { %v765_v42 = vadd.f32 %v1409_v41, %v1770_v27  ;;  %v756_v43 = vpop.f32.mrb[37].mxu0 }
 0x29f   :  { %v757_v44 = vadd.f32 %v1770_v27, %v756_v43  ;;  %v1410_v45 = vpop.f32.mrb[38].mxu0  ;;  %1439 = vmatprep.mubr.msk.bf16.mxu1 %vm377_vm1, %v904_v40 }
 0x2a0   :  { %v768_v46 = vadd.f32 %v1410_v45, %v1770_v27  ;;  %v759_v47 = vpop.f32.mrb[39].mxu0  ;;  %1440 = vmatmul.mubr.msk.bf16.vlgmr.msra.gmra.mrb[32].mxu1 %vm377_vm1, %v905_v39  ;;  %v873_v49 = vmax.f32 %v765_v42, 0.0 }
 0x2a1   :  { %v760_v48 = vadd.f32 %v1770_v27, %v759_v47  ;;  %v871_v51 = vmax.f32 %v757_v44, 0.0 }
 0x2a2   :  { %v874_v50 = vmax.f32 %v768_v46, 0.0 }
 0x2a3   :  { %v872_v52 = vmax.f32 %v760_v48, 0.0 }
 0x2a4   :  { %v907_v54 = vpack.c.bf16 %v874_v50, %v873_v49 }
 0x2a5   :  { %v906_v55 = vpack.c.bf16 %v872_v52, %v871_v51  ;;  %v1413_v56 = vpop.f32.mrb[40].mxu0 }
 0x2a6   :  { %v781_v57 = vadd.f32 %v1413_v56, %v1770_v27  ;;  %v772_v58 = vpop.f32.mrb[41].mxu0 }
 0x2a7   :  { %v773_v59 = vadd.f32 %v1770_v27, %v772_v58  ;;  %v1414_v60 = vpop.f32.mrb[42].mxu0  ;;  %1443 = vmatprep.mubr.msk.bf16.mxu1 %vm377_vm1, %v906_v55 }
 0x2a8   :  { %v784_v61 = vadd.f32 %v1414_v60, %v1770_v27  ;;  %v775_v62 = vpop.f32.mrb[43].mxu0  ;;  %1444 = vmatmul.mubr.msk.bf16.gmra.mrb[36].mxu1 %vm377_vm1, %v907_v54  ;;  %v877_v0 = vmax.f32 %v781_v57, 0.0 }
 0x2a9   :  { %v776_v63 = vadd.f32 %v1770_v27, %v775_v62  ;;  %v875_v2 = vmax.f32 %v773_v59, 0.0 }
 0x2aa   :  { %v878_v1 = vmax.f32 %v784_v61, 0.0 }
 0x2ab   :  { %v876_v3 = vmax.f32 %v776_v63, 0.0 }
 0x2ac   :  { %v909_v4 = vpack.c.bf16 %v878_v1, %v877_v0 }
 0x2ad   :  { %v908_v5 = vpack.c.bf16 %v876_v3, %v875_v2  ;;  %v1417_v6 = vpop.f32.mrb[44].mxu0 }
 0x2ae   :  { %v797_v7 = vadd.f32 %v1417_v6, %v1770_v27  ;;  %v788_v8 = vpop.f32.mrb[45].mxu0 }
 0x2af   :  { %v789_v9 = vadd.f32 %v1770_v27, %v788_v8  ;;  %v1418_v10 = vpop.f32.mrb[46].mxu0  ;;  %1447 = vmatprep.mubr.msk.bf16.mxu1 %vm377_vm1, %v908_v5 }
 0x2b0   :  { %v800_v11 = vadd.f32 %v1418_v10, %v1770_v27  ;;  %v791_v12 = vpop.f32.mrb[47].mxu0  ;;  %1448 = vmatmul.mubr.msk.bf16.gmra.mrb[40].mxu1 %vm377_vm1, %v909_v4  ;;  %v881_v14 = vmax.f32 %v797_v7, 0.0 }
 0x2b1   :  { %v792_v13 = vadd.f32 %v1770_v27, %v791_v12  ;;  %v879_v16 = vmax.f32 %v789_v9, 0.0 }
 0x2b2   :  { %v882_v15 = vmax.f32 %v800_v11, 0.0 }
 0x2b3   :  { %v880_v17 = vmax.f32 %v792_v13, 0.0  ;;  %v1823_v13 = vld [vmem:[%s1961_s8] ss:$0 sm:$0xff] }
 0x2b4   :  { %v911_v18 = vpack.c.bf16 %v882_v15, %v881_v14 }
 0x2b5   :  { %v910_v19 = vpack.c.bf16 %v880_v17, %v879_v16  ;;  %v1421_v20 = vpop.f32.mrb[48].mxu0 }
 0x2b6   :  { %v813_v21 = vadd.f32 %v1421_v20, %v1770_v27  ;;  %v804_v22 = vpop.f32.mrb[49].mxu0 }
 0x2b7   :  { %v805_v23 = vadd.f32 %v1770_v27, %v804_v22  ;;  %v1422_v24 = vpop.f32.mrb[50].mxu0  ;;  %1451 = vmatprep.mubr.msk.bf16.mxu1 %vm377_vm1, %v910_v19 }
 0x2b8   :  { %v816_v25 = vadd.f32 %v1422_v24, %v1770_v27  ;;  %v807_v26 = vpop.f32.mrb[51].mxu0  ;;  %1452 = vmatmul.mubr.msk.bf16.gmra.mrb[44].mxu1 %vm377_vm1, %v911_v18  ;;  %v885_v29 = vmax.f32 %v813_v21, 0.0 }
 0x2b9   :  { %v808_v28 = vadd.f32 %v1770_v27, %v807_v26  ;;  %v883_v53 = vmax.f32 %v805_v23, 0.0 }
 0x2ba   :  { %v886_v30 = vmax.f32 %v816_v25, 0.0 }
 0x2bb   :  { %v884_v31 = vmax.f32 %v808_v28, 0.0 }
 0x2bc   :  { %v913_v32 = vpack.c.bf16 %v886_v30, %v885_v29 }
 0x2bd   :  { %v912_v33 = vpack.c.bf16 %v884_v31, %v883_v53  ;;  %v1425_v34 = vpop.f32.mrb[52].mxu0 }
 0x2be   :  { %v829_v35 = vadd.f32 %v1425_v34, %v1770_v27  ;;  %v820_v36 = vpop.f32.mrb[53].mxu0 }
 0x2bf   :  { %v821_v37 = vadd.f32 %v1770_v27, %v820_v36  ;;  %v1426_v38 = vpop.f32.mrb[54].mxu0  ;;  %1455 = vmatprep.mubr.msk.bf16.mxu1 %vm377_vm1, %v912_v33 }
 0x2c0   :  { %v832_v39 = vadd.f32 %v1426_v38, %v1770_v27  ;;  %v823_v40 = vpop.f32.mrb[55].mxu0  ;;  %1456 = vmatmul.mubr.msk.bf16.gmra.mrb[48].mxu1 %vm377_vm1, %v913_v32  ;;  %v889_v42 = vmax.f32 %v829_v35, 0.0 }
 0x2c1   :  { %v824_v41 = vadd.f32 %v1770_v27, %v823_v40  ;;  %v887_v44 = vmax.f32 %v821_v37, 0.0 }
 0x2c2   :  { %v890_v43 = vmax.f32 %v832_v39, 0.0 }
 0x2c3   :  { %v888_v45 = vmax.f32 %v824_v41, 0.0 }
 0x2c4   :  { %v915_v46 = vpack.c.bf16 %v890_v43, %v889_v42 }
 0x2c5   :  { %v914_v47 = vpack.c.bf16 %v888_v45, %v887_v44  ;;  %v1429_v48 = vpop.f32.mrb[56].mxu0 }
 0x2c6   :  { %v845_v49 = vadd.f32 %v1429_v48, %v1770_v27  ;;  %v836_v50 = vpop.f32.mrb[57].mxu0 }
 0x2c7   :  { %v837_v51 = vadd.f32 %v1770_v27, %v836_v50  ;;  %v1430_v52 = vpop.f32.mrb[58].mxu0  ;;  %1459 = vmatprep.mubr.msk.bf16.mxu1 %vm377_vm1, %v914_v47 }
 0x2c8   :  { %v848_v54 = vadd.f32 %v1430_v52, %v1770_v27  ;;  %v839_v55 = vpop.f32.mrb[59].mxu0  ;;  %1460 = vmatmul.mubr.msk.bf16.gmra.mrb[52].mxu1 %vm377_vm1, %v915_v46  ;;  %v893_v57 = vmax.f32 %v845_v49, 0.0 }
 0x2c9   :  { %v840_v56 = vadd.f32 %v1770_v27, %v839_v55  ;;  %v891_v59 = vmax.f32 %v837_v51, 0.0 }
 0x2ca   :  { %v894_v58 = vmax.f32 %v848_v54, 0.0 }
 0x2cb   :  { %v892_v60 = vmax.f32 %v840_v56, 0.0 }
 0x2cc   :  { %v917_v61 = vpack.c.bf16 %v894_v58, %v893_v57 }
 0x2cd   :  { %v916_v62 = vpack.c.bf16 %v892_v60, %v891_v59  ;;  %v1433_v63 = vpop.f32.mrb[60].mxu0 }
 0x2ce   :  { %v861_v0 = vadd.f32 %v1433_v63, %v1770_v27  ;;  %v852_v1 = vpop.f32.mrb[61].mxu0 }
 0x2cf   :  { %v853_v2 = vadd.f32 %v1770_v27, %v852_v1  ;;  %v1434_v3 = vpop.f32.mrb[62].mxu0  ;;  %1463 = vmatprep.mubr.msk.bf16.mxu1 %vm377_vm1, %v916_v62 }
 0x2d0   :  { %v864_v4 = vadd.f32 %v1434_v3, %v1770_v27  ;;  %v855_v5 = vpop.f32.mrb[63].mxu0  ;;  %1464 = vmatmul.mubr.msk.bf16.gmra.mrb[56].mxu1 %vm377_vm1, %v917_v61  ;;  %v897_v7 = vmax.f32 %v861_v0, 0.0 }
 0x2d1   :  { %v856_v6 = vadd.f32 %v1770_v27, %v855_v5  ;;  %v895_v9 = vmax.f32 %v853_v2, 0.0 }
 0x2d2   :  { %v898_v8 = vmax.f32 %v864_v4, 0.0 }
 0x2d3   :  { %v896_v10 = vmax.f32 %v856_v6, 0.0 }
 0x2d4   :  { %v919_v11 = vpack.c.bf16 %v898_v8, %v897_v7 }
 0x2d5   :  { %v918_v12 = vpack.c.bf16 %v896_v10, %v895_v9 }
 0x2d7   :  { %1467 = vmatprep.mubr.msk.bf16.mxu1 %vm377_vm1, %v918_v12 }
 0x2d8   :  { %1468 = vmatmul.mubr.msk.bf16.gmra.mrb[60].mxu1 %vm377_vm1, %v919_v11 }
 0x373   :  { %v1441_v14 = vpop.f32.mrb[32].mxu1 }
 0x374   :  { %v1029_v15 = vadd.f32 %v1441_v14, %v1823_v13  ;;  %v1020_v16 = vpop.f32.mrb[33].mxu1 }
 0x375   :  { %v1021_v27 = vadd.f32 %v1823_v13, %v1020_v16  ;;  %v1442_v17 = vpop.f32.mrb[34].mxu1 }
 0x376   :  { %1149 = vst [vmem:[%s1962_s9 + $0x10] sm:$0xff] %v1029_v15  ;;  %v1032_v18 = vadd.f32 %v1442_v17, %v1823_v13  ;;  %v1023_v19 = vpop.f32.mrb[35].mxu1 }
 0x377   :  { %1147 = vst [vmem:[%s1962_s9] sm:$0xff] %v1021_v27  ;;  %v1024_v20 = vadd.f32 %v1823_v13, %v1023_v19 }
 0x378   :  { %1150 = vst [vmem:[%s1962_s9 + $0x18] sm:$0xff] %v1032_v18 }
 0x379   :  { %1148 = vst [vmem:[%s1962_s9 + $0x8] sm:$0xff] %v1024_v20 }
 0x37b   :  { %v1445_v21 = vpop.f32.mrb[36].mxu1 }
 0x37c   :  { %v1045_v22 = vadd.f32 %v1445_v21, %v1823_v13  ;;  %v1036_v23 = vpop.f32.mrb[37].mxu1 }
 0x37d   :  { %v1037_v24 = vadd.f32 %v1823_v13, %v1036_v23  ;;  %v1446_v25 = vpop.f32.mrb[38].mxu1 }
 0x37e   :  { %1153 = vst [vmem:[%s1962_s9 + $0x30] sm:$0xff] %v1045_v22  ;;  %v1048_v26 = vadd.f32 %v1446_v25, %v1823_v13  ;;  %v1039_v28 = vpop.f32.mrb[39].mxu1 }
 0x37f   :  { %1151 = vst [vmem:[%s1962_s9 + $0x20] sm:$0xff] %v1037_v24  ;;  %v1040_v29 = vadd.f32 %v1823_v13, %v1039_v28 }
 0x380   :  { %1154 = vst [vmem:[%s1962_s9 + $0x38] sm:$0xff] %v1048_v26 }
 0x381   :  { %1152 = vst [vmem:[%s1962_s9 + $0x28] sm:$0xff] %v1040_v29 }
 0x383   :  { %v1449_v30 = vpop.f32.mrb[40].mxu1 }
 0x384   :  { %v1061_v53 = vadd.f32 %v1449_v30, %v1823_v13  ;;  %v1052_v31 = vpop.f32.mrb[41].mxu1 }
 0x385   :  { %v1053_v32 = vadd.f32 %v1823_v13, %v1052_v31  ;;  %v1450_v33 = vpop.f32.mrb[42].mxu1 }
 0x386   :  { %1157 = vst [vmem:[%s1962_s9 + $0x50] sm:$0xff] %v1061_v53  ;;  %v1064_v34 = vadd.f32 %v1450_v33, %v1823_v13  ;;  %v1055_v35 = vpop.f32.mrb[43].mxu1 }
 0x387   :  { %1155 = vst [vmem:[%s1962_s9 + $0x40] sm:$0xff] %v1053_v32  ;;  %v1056_v36 = vadd.f32 %v1823_v13, %v1055_v35 }
 0x388   :  { %1158 = vst [vmem:[%s1962_s9 + $0x58] sm:$0xff] %v1064_v34 }
 0x389   :  { %1156 = vst [vmem:[%s1962_s9 + $0x48] sm:$0xff] %v1056_v36 }
 0x38b   :  { %v1453_v37 = vpop.f32.mrb[44].mxu1 }
 0x38c   :  { %v1077_v38 = vadd.f32 %v1453_v37, %v1823_v13  ;;  %v1068_v39 = vpop.f32.mrb[45].mxu1 }
 0x38d   :  { %v1069_v40 = vadd.f32 %v1823_v13, %v1068_v39  ;;  %v1454_v41 = vpop.f32.mrb[46].mxu1 }
 0x38e   :  { %1161 = vst [vmem:[%s1962_s9 + $0x70] sm:$0xff] %v1077_v38  ;;  %v1080_v42 = vadd.f32 %v1454_v41, %v1823_v13  ;;  %v1071_v43 = vpop.f32.mrb[47].mxu1 }
 0x38f   :  { %1159 = vst [vmem:[%s1962_s9 + $0x60] sm:$0xff] %v1069_v40  ;;  %v1072_v44 = vadd.f32 %v1823_v13, %v1071_v43 }
 0x390   :  { %1162 = vst [vmem:[%s1962_s9 + $0x78] sm:$0xff] %v1080_v42 }
 0x391   :  { %1160 = vst [vmem:[%s1962_s9 + $0x68] sm:$0xff] %v1072_v44 }
 0x393   :  { %v1457_v45 = vpop.f32.mrb[48].mxu1 }
 0x394   :  { %v1093_v46 = vadd.f32 %v1457_v45, %v1823_v13  ;;  %v1084_v47 = vpop.f32.mrb[49].mxu1 }
 0x395   :  { %v1085_v48 = vadd.f32 %v1823_v13, %v1084_v47  ;;  %v1458_v49 = vpop.f32.mrb[50].mxu1 }
 0x396   :  { %1165 = vst [vmem:[%s1962_s9 + $0x90] sm:$0xff] %v1093_v46  ;;  %v1096_v50 = vadd.f32 %v1458_v49, %v1823_v13  ;;  %v1087_v51 = vpop.f32.mrb[51].mxu1 }
 0x397   :  { %1163 = vst [vmem:[%s1962_s9 + $0x80] sm:$0xff] %v1085_v48  ;;  %v1088_v52 = vadd.f32 %v1823_v13, %v1087_v51 }
 0x398   :  { %1166 = vst [vmem:[%s1962_s9 + $0x98] sm:$0xff] %v1096_v50 }
 0x399   :  { %1164 = vst [vmem:[%s1962_s9 + $0x88] sm:$0xff] %v1088_v52 }
 0x39b   :  { %v1461_v54 = vpop.f32.mrb[52].mxu1 }
 0x39c   :  { %v1109_v55 = vadd.f32 %v1461_v54, %v1823_v13  ;;  %v1100_v56 = vpop.f32.mrb[53].mxu1 }
 0x39d   :  { %v1101_v57 = vadd.f32 %v1823_v13, %v1100_v56  ;;  %v1462_v58 = vpop.f32.mrb[54].mxu1 }
 0x39e   :  { %1169 = vst [vmem:[%s1962_s9 + $0xb0] sm:$0xff] %v1109_v55  ;;  %v1112_v59 = vadd.f32 %v1462_v58, %v1823_v13  ;;  %v1103_v60 = vpop.f32.mrb[55].mxu1 }
 0x39f   :  { %1167 = vst [vmem:[%s1962_s9 + $0xa0] sm:$0xff] %v1101_v57  ;;  %v1104_v61 = vadd.f32 %v1823_v13, %v1103_v60 }
 0x3a0   :  { %1170 = vst [vmem:[%s1962_s9 + $0xb8] sm:$0xff] %v1112_v59 }
 0x3a1   :  { %1168 = vst [vmem:[%s1962_s9 + $0xa8] sm:$0xff] %v1104_v61 }
 0x3a3   :  { %v1465_v62 = vpop.f32.mrb[56].mxu1 }
 0x3a4   :  { %v1125_v63 = vadd.f32 %v1465_v62, %v1823_v13  ;;  %v1116_v0 = vpop.f32.mrb[57].mxu1 }
 0x3a5   :  { %v1117_v1 = vadd.f32 %v1823_v13, %v1116_v0  ;;  %v1466_v2 = vpop.f32.mrb[58].mxu1 }
 0x3a6   :  { %1173 = vst [vmem:[%s1962_s9 + $0xd0] sm:$0xff] %v1125_v63  ;;  %v1128_v3 = vadd.f32 %v1466_v2, %v1823_v13  ;;  %v1119_v4 = vpop.f32.mrb[59].mxu1 }
 0x3a7   :  { %1171 = vst [vmem:[%s1962_s9 + $0xc0] sm:$0xff] %v1117_v1  ;;  %v1120_v5 = vadd.f32 %v1823_v13, %v1119_v4 }
 0x3a8   :  { %1174 = vst [vmem:[%s1962_s9 + $0xd8] sm:$0xff] %v1128_v3 }
 0x3a9   :  { %1172 = vst [vmem:[%s1962_s9 + $0xc8] sm:$0xff] %v1120_v5 }
 0x3ab   :  { %v1469_v6 = vpop.f32.mrb[60].mxu1 }
 0x3ac   :  { %v1141_v7 = vadd.f32 %v1469_v6, %v1823_v13  ;;  %v1132_v8 = vpop.f32.mrb[61].mxu1 }
 0x3ad   :  { %v1133_v9 = vadd.f32 %v1823_v13, %v1132_v8  ;;  %v1470_v10 = vpop.f32.mrb[62].mxu1 }
 0x3ae   :  { %1177 = vst [vmem:[%s1962_s9 + $0xf0] sm:$0xff] %v1141_v7  ;;  %v1144_v11 = vadd.f32 %v1470_v10, %v1823_v13  ;;  %v1135_v12 = vpop.f32.mrb[63].mxu1 }
 0x3af   :  { %1175 = vst [vmem:[%s1962_s9 + $0xe0] sm:$0xff] %v1133_v9  ;;  %v1136_v14 = vadd.f32 %v1823_v13, %v1135_v12 }
 0x3b0   :  { %1178 = vst [vmem:[%s1962_s9 + $0xf8] sm:$0xff] %v1144_v11 }
 0x3b1   :  { %1176 = vst [vmem:[%s1962_s9 + $0xe8] sm:$0xff] %v1136_v14 }

</bundles_post_ra>
